<compile_context>
chip_gen: v6e
topology: v6e:2x2x1
jax: 0.10.0
libtpu: 0.0.40
codegen_flags: <defaults>
</compile_context>

<pallas_src>
import numpy as np
import jax
import jax.numpy as jnp
from jax.experimental import pallas as pl
from jax.experimental.pallas import tpu as pltpu

L_FILTER = [-0.0106, 0.0329, 0.0308, -0.187, -0.028, 0.6309, 0.7148, 0.2304]
H_FILTER = [-0.2304, 0.7148, -0.6309, -0.028, 0.187, 0.0308, -0.0329, -0.0106]
HIDDEN = 64  # hard-coded in the PyTorch module


def _round_up(x, m):
    return (x + m - 1) // m * m


def _cdiv(a, b):
    return -(-a // b)


def _pad_rows(x2d, rows):
    r = x2d.shape[0]
    if rows == r:
        return x2d
    return jnp.pad(x2d, ((0, rows - r), (0, 0)))


# ---------------------------------------------------------------------------
# deterministic parameter construction (mirrors Wavelet_LSTM.__init__)
# ---------------------------------------------------------------------------
def create_W(P, is_l, rng):
    filt = L_FILTER if is_l else H_FILTER
    max_eps = float(np.min(np.abs(filt)))
    w = rng.standard_normal((P, P)) * 0.1 * max_eps
    for i in range(P):
        fi = 0
        for j in range(i, P):
            if fi < len(filt):
                w[i, j] = filt[fi]
                fi += 1
    return w.astype(np.float32)


def init_params(subcarrier_num, activity_num, seq_len, key):
    rng = np.random.default_rng(0)
    T, T2 = seq_len, seq_len // 2
    C, H = subcarrier_num, HIDDEN
    ks = jax.random.split(key, 12)

    def uni(k, shape, bound):
        return jax.random.uniform(k, shape, jnp.float32, -bound, bound)

    p = {}
    p["W1H"] = jnp.asarray(create_W(T, False, rng))
    p["W1L"] = jnp.asarray(create_W(T, True, rng))
    p["W2H"] = jnp.asarray(create_W(T2, False, rng))
    p["W2L"] = jnp.asarray(create_W(T2, True, rng))
    p["b1H"] = uni(ks[0], (T,), 1.0 / np.sqrt(T))
    p["b1L"] = uni(ks[1], (T,), 1.0 / np.sqrt(T))
    p["b2H"] = uni(ks[2], (T2,), 1.0 / np.sqrt(T2))
    p["b2L"] = uni(ks[3], (T2,), 1.0 / np.sqrt(T2))

    bd = 1.0 / np.sqrt(H)

    def lstm_params(k):
        k1, k2, k3, k4 = jax.random.split(k, 4)
        return (uni(k1, (4 * H, C), bd), uni(k2, (4 * H, H), bd),
                uni(k3, (4 * H,), bd), uni(k4, (4 * H,), bd))

    p["lstm1"] = lstm_params(ks[4])
    p["lstm2"] = lstm_params(ks[5])
    p["lstm3"] = lstm_params(ks[6])

    emb_dim = 3 * H
    bo = 1.0 / np.sqrt(emb_dim)
    p["Wout"] = uni(ks[7], (activity_num, emb_dim), bo)
    p["bout"] = uni(ks[8], (activity_num,), bo)
    return p


# ---------------------------------------------------------------------------
# one-time parameter preparation (bf16 casts, gate reorder + g-scale, fusion)
# ---------------------------------------------------------------------------
def prepare_params(p):
    """Pre-cast / reorder all static weights once, outside the jitted forward."""
    H = HIDDEN
    T = p["W1H"].shape[0]
    T2 = T // 2

    def fuse_wavelet(wH, wL, bH, bL):
        w = jnp.concatenate([wH.T, wL.T], axis=1).astype(jnp.bfloat16)      # (T, 2T)
        b = jnp.concatenate([bH, bL]).reshape(1, -1).astype(jnp.float32)    # (1, 2T)
        return w, b

    def pool_mat(T_):
        m = np.zeros((T_, T_ // 2), np.float32)
        for k in range(T_ // 2):
            m[2 * k, k] = 0.5
            m[2 * k + 1, k] = 0.5
        return jnp.asarray(m).astype(jnp.bfloat16)

    w1, b1 = fuse_wavelet(p["W1H"], p["W1L"], p["b1H"], p["b1L"])
    w2, b2 = fuse_wavelet(p["W2H"], p["W2L"], p["b2H"], p["b2L"])

    def reorder_scale(m):
        # PyTorch gate rows [i, f, g, o] -> [i, f, o, 2*g]
        # (g pre-scaled by 2 so tanh(g) = 2*sigmoid(2g) - 1 in the kernel)
        return jnp.concatenate([m[:2 * H], m[3 * H:4 * H], 2.0 * m[2 * H:3 * H]],
                               axis=0)

    wih_l, whh_l, bias_l = [], [], []
    for name in ("lstm1", "lstm2", "lstm3"):
        w_ih, w_hh, b_ih, b_hh = p[name]
        wih_l.append(reorder_scale(w_ih).T.astype(jnp.bfloat16))            # (C, 4H)
        whh_l.append(reorder_scale(w_hh).T.astype(jnp.bfloat16))            # (H, 4H)
        bias_l.append(reorder_scale(b_ih + b_hh).reshape(1, 4 * H)
                      .astype(jnp.float32))                                 # (1, 4H)

    return {
        "w1": w1, "b1": b1, "pool1": pool_mat(T),
        "w2": w2, "b2": b2, "pool2": pool_mat(T2),
        "wih": jnp.stack(wih_l),        # (3, C, 4H) bf16
        "whh": jnp.stack(whh_l),        # (3, H, 4H) bf16
        "bias": jnp.stack(bias_l),      # (3, 1, 4H) f32
        "Wout": p["Wout"], "bout": p["bout"],
    }


# ---------------------------------------------------------------------------
# Pallas kernels
# ---------------------------------------------------------------------------
def _wavelet_kernel(x_ref, w_ref, b_ref, pool_ref, xh_ref, xl_ref):
    """Fused H+L wavelet linear + f32 sigmoid + avg-pool for one row tile."""
    T = pool_ref.shape[0]
    a = jax.nn.sigmoid(
        jnp.dot(x_ref[...], w_ref[...], preferred_element_type=jnp.float32)
        + b_ref[...])                                     # (rows, 2T) f32
    ab = a.astype(jnp.bfloat16)
    pool = pool_ref[...]                                  # (T, T//2) bf16
    xh_ref[...] = jnp.dot(ab[:, :T], pool,
                          preferred_element_type=jnp.float32).astype(jnp.bfloat16)
    xl_ref[...] = jnp.dot(ab[:, T:], pool,
                          preferred_element_type=jnp.float32).astype(jnp.bfloat16)


def _gates_kernel(x_ref, w_ref, b_ref, o_ref):
    """Hoisted LSTM input projection: (rows, C) @ (C, 4H) + b -> bf16."""
    o_ref[...] = (jnp.dot(x_ref[...], w_ref[...],
                          preferred_element_type=jnp.float32)
                  + b_ref[...]).astype(jnp.bfloat16)


def _lstm_recurrence_kernel(lens_ref, gx_ref, whh_ref, h_out_ref, h_sc, c_sc):
    """Serial LSTM recurrence over one S-chunk; (h, c) carried in VMEM scratch.

    lens_ref : SMEM (3,) int32 — per-LSTM valid sequence length (scalar prefetch)
    gx_ref   : (chunk, B_pad, 4H) bf16 — precomputed x-gates (+ biases),
               gate order [i, f, o, 2*g]
    whh_ref  : (H, 4H) bf16 — columns in [i, f, o, 2*g] order
    h_out_ref: (B_pad, H) f32 — final hidden state (written on the last chunk)
    """
    chunk, B, G = gx_ref.shape
    H = G // 4
    n = pl.program_id(0)
    s = pl.program_id(1)

    @pl.when(s == 0)
    def _():
        h_sc[...] = jnp.zeros_like(h_sc)
        c_sc[...] = jnp.zeros_like(c_sc)

    start = s * chunk
    valid = jnp.clip(lens_ref[n] - start, 0, chunk)

    whh = whh_ref[...]                                    # held across the loop

    def step(t, carry):
        h, c = carry
        gates = gx_ref[t].astype(jnp.float32) + jnp.dot(
            h.astype(jnp.bfloat16), whh, preferred_element_type=jnp.float32)
        sg = jax.nn.sigmoid(gates)                        # one EUP push over 4H lanes
        i = sg[:, :H]
        f = sg[:, H:2 * H]
        o = sg[:, 2 * H:3 * H]
        g = 2.0 * sg[:, 3 * H:] - 1.0                     # tanh(g) = 2*sigmoid(2g) - 1
        c_new = f * c + i * g
        h_new = o * jnp.tanh(c_new)
        return h_new, c_new

    h_fin, c_fin = jax.lax.fori_loop(0, valid, step, (h_sc[...], c_sc[...]))
    h_sc[...] = h_fin
    c_sc[...] = c_fin

    @pl.when(s == pl.num_programs(1) - 1)
    def _():
        h_out_ref[...] = h_sc[...]


# ---------------------------------------------------------------------------
# wrappers
# ---------------------------------------------------------------------------
def wavelet_stage(xp, w_fused, b_fused, pool, row_block):
    """xp: (R_pad, T) bf16 -> (xh, xl), each (R_pad, T//2) bf16."""
    R_pad, T = xp.shape
    To = T // 2
    out_shape = (jax.ShapeDtypeStruct((R_pad, To), jnp.bfloat16),
                 jax.ShapeDtypeStruct((R_pad, To), jnp.bfloat16))
    return pl.pallas_call(
        _wavelet_kernel,
        out_shape=out_shape,
        grid=(R_pad // row_block,),
        in_specs=[
            pl.BlockSpec((row_block, T), lambda r: (r, 0)),
            pl.BlockSpec((T, 2 * T), lambda r: (0, 0)),
            pl.BlockSpec((1, 2 * T), lambda r: (0, 0)),
            pl.BlockSpec((T, To), lambda r: (0, 0)),
        ],
        out_specs=(
            pl.BlockSpec((row_block, To), lambda r: (r, 0)),
            pl.BlockSpec((row_block, To), lambda r: (r, 0)),
        ),
        compiler_params=pltpu.CompilerParams(dimension_semantics=("parallel",)),
    )(xp, w_fused, b_fused, pool)


def gate_projection(xs_flat, wih, bias, row_block):
    """xs_flat: (3, M, C) bf16, M = S_pad*B_pad -> (3, M, 4H) bf16 gate pre-acts."""
    N, M, C = xs_flat.shape
    G = wih.shape[2]
    return pl.pallas_call(
        _gates_kernel,
        out_shape=jax.ShapeDtypeStruct((N, M, G), jnp.bfloat16),
        grid=(N, M // row_block),
        in_specs=[
            pl.BlockSpec((None, row_block, C), lambda n, s: (n, s, 0)),
            pl.BlockSpec((None, C, G), lambda n, s: (n, 0, 0)),
            pl.BlockSpec((None, 1, G), lambda n, s: (n, 0, 0)),
        ],
        out_specs=pl.BlockSpec((None, row_block, G), lambda n, s: (n, s, 0)),
        compiler_params=pltpu.CompilerParams(
            dimension_semantics=("parallel", "parallel")),
    )(xs_flat, wih, bias)


def lstm_recurrence(lens, gates, whh, chunk):
    """lens: (3,) int32; gates: (3, S_pad, B_pad, 4H) bf16; whh: (3, H, 4H) bf16.

    Returns (3, B_pad, H) f32 final hidden states.  Grid = (LSTM, S-chunk) with
    the LSTM axis parallel (megacore) and the S axis arbitrary (serial carry).
    """
    N, S_pad, B_pad, G = gates.shape
    H = G // 4
    n_chunks = S_pad // chunk
    return pl.pallas_call(
        _lstm_recurrence_kernel,
        out_shape=jax.ShapeDtypeStruct((N, B_pad, H), jnp.float32),
        grid_spec=pltpu.PrefetchScalarGridSpec(
            num_scalar_prefetch=1,
            grid=(N, n_chunks),
            in_specs=[
                pl.BlockSpec((None, chunk, B_pad, G), lambda n, s, lens: (n, s, 0, 0)),
                pl.BlockSpec((None, H, G), lambda n, s, lens: (n, 0, 0)),
            ],
            out_specs=pl.BlockSpec((None, B_pad, H), lambda n, s, lens: (n, 0, 0)),
            scratch_shapes=[pltpu.VMEM((B_pad, H), jnp.float32),
                            pltpu.VMEM((B_pad, H), jnp.float32)],
        ),
        compiler_params=pltpu.CompilerParams(
            dimension_semantics=("parallel", "arbitrary")),
    )(lens, gates, whh)


def wavelet_lstm_forward(x, prep):
    """x: (B, subcarrier_num, seq_len) float32, like the PyTorch module."""
    B, C, T = x.shape
    H = HIDDEN
    S1, S2 = T // 2, T // 4
    R = B * C

    # -------- wavelet (mWDN) stage: rows = batch*subcarrier, time on lanes ----
    row_block = min(256, _round_up(R, 16))
    R_pad = _round_up(R, row_block)
    xp = _pad_rows(x.reshape(R, T), R_pad).astype(jnp.bfloat16)

    xh1, xl1 = wavelet_stage(xp, prep["w1"], prep["b1"], prep["pool1"], row_block)
    xh2, xl2 = wavelet_stage(xl1, prep["w2"], prep["b2"], prep["pool2"], row_block)
    # padded rows only ever produce padded output rows (row-wise linear ops) and
    # are sliced away below before the gate projection.

    # -------- layout for the LSTMs -------------------------------------------
    B_pad = _round_up(B, 16)                      # bf16 sublane-dense batch
    n_chunks = _cdiv(S1, 128)                     # keep chunk <= ~128 steps
    chunk = _round_up(_cdiv(S1, n_chunks), 8)
    S_pad = chunk * n_chunks

    def time_major(y2d, S):
        # (B*C, S) bf16 -> (S_pad, B_pad, C), zero-padded (never executed steps)
        y = y2d[:R].reshape(B, C, S).transpose(2, 0, 1)
        return jnp.pad(y, ((0, S_pad - S), (0, B_pad - B), (0, 0)))

    xs = jnp.stack([time_major(xh1, S1),
                    time_major(xh2, S2),
                    time_major(xl2, S2)])                    # (3, S_pad, B_pad, C)
    xs_flat = xs.reshape(3, S_pad * B_pad, C)

    # -------- hoisted input projection (one big bf16 MXU matmul per LSTM) -----
    gates_flat = gate_projection(xs_flat, prep["wih"], prep["bias"],
                                 row_block=chunk * B_pad)    # (3, M, 4H) bf16
    gates = gates_flat.reshape(3, S_pad, B_pad, 4 * H)

    # -------- streamed serial recurrence --------------------------------------
    lens = jnp.array([S1, S2, S2], jnp.int32)
    h = lstm_recurrence(lens, gates, prep["whh"], chunk)     # (3, B_pad, H) f32

    embedding = jnp.concatenate([h[0, :B], h[1, :B], h[2, :B]], axis=1)  # (B, 192)
    # Tiny classifier left to XLA (a kernel here is pure launch overhead).
    cls = embedding @ prep["Wout"].T + prep["bout"]                      # (B, A)
    return embedding, cls


# ---------------------------------------------------------------------------
# pure-JAX f32 reference (numerical sanity check)
# ---------------------------------------------------------------------------
def reference_forward(x, p):
    sig = jax.nn.sigmoid
    lin = lambda v, W, b: v @ W.T + b

    def pool(v):
        B_, C_, T_ = v.shape
        return v[..., :2 * (T_ // 2)].reshape(B_, C_, T_ // 2, 2).mean(-1)

    ah1 = sig(lin(x, p["W1H"], p["b1H"]))
    al1 = sig(lin(x, p["W1L"], p["b1L"]))
    xh1, xl1 = pool(ah1), pool(al1)
    ah2 = sig(lin(xl1, p["W2H"], p["b2H"]))
    al2 = sig(lin(xl1, p["W2L"], p["b2L"]))
    xh2, xl2 = pool(ah2), pool(al2)

    def lstm_ref(seq_bsc, w_ih, w_hh, b_ih, b_hh):
        B_, _, _ = seq_bsc.shape
        H_ = w_hh.shape[1]

        def step(carry, x_t):
            h, c = carry
            gates = x_t @ w_ih.T + b_ih + h @ w_hh.T + b_hh
            i = jax.nn.sigmoid(gates[:, :H_])
            f = jax.nn.sigmoid(gates[:, H_:2 * H_])
            g = jnp.tanh(gates[:, 2 * H_:3 * H_])
            o = jax.nn.sigmoid(gates[:, 3 * H_:])
            c = f * c + i * g
            h = o * jnp.tanh(c)
            return (h, c), None

        init = (jnp.zeros((B_, H_), jnp.float32), jnp.zeros((B_, H_), jnp.float32))
        (h, _), _ = jax.lax.scan(step, init, jnp.transpose(seq_bsc, (1, 0, 2)))
        return h

    h1 = lstm_ref(jnp.transpose(xh1, (0, 2, 1)), *p["lstm1"])
    h2 = lstm_ref(jnp.transpose(xh2, (0, 2, 1)), *p["lstm2"])
    h3 = lstm_ref(jnp.transpose(xl2, (0, 2, 1)), *p["lstm3"])
    emb = jnp.concatenate([h1, h2, h3], axis=1)
    cls = emb @ p["Wout"].T + p["bout"]
    return emb, cls


if __name__ == "__main__":
    # small shapes consistent with the module: input (batch, subcarrier, seq_len)
    B, C, T, A = 2, 8, 16, 6
    key = jax.random.PRNGKey(0)
    kx, kp = jax.random.split(key)
    params = init_params(C, A, T, kp)
    prep = prepare_params(params)
    x = jax.random.normal(kx, (B, C, T), jnp.float32)

    fwd = jax.jit(wavelet_lstm_forward)
    emb, cls = fwd(x, prep)
    jax.block_until_ready((emb, cls))

    ref_emb, ref_cls = reference_forward(x, params)
    assert emb.shape == (B, 3 * HIDDEN) and cls.shape == (B, A)
    # bf16 matmul operands / bf16 activation storage (f32 accumulation & sigmoid)
    # -> slightly looser tolerance vs the pure-f32 reference
    assert np.allclose(np.asarray(emb), np.asarray(ref_emb), rtol=2e-2, atol=2e-2)
    assert np.allclose(np.asarray(cls), np.asarray(ref_cls), rtol=2e-2, atol=2e-2)
    print("KERNEL_OK")
</pallas_src>

<mosaic_0001>
module attributes {stable_mosaic.version = 11 : i64} {
  func.func @_wavelet_kernel(%arg0: i32, %arg1: memref<16x16xbf16, #tpu.memory_space<vmem>>, %arg2: memref<16x32xbf16, #tpu.memory_space<vmem>>, %arg3: memref<1x32xf32, #tpu.memory_space<vmem>>, %arg4: memref<16x8xbf16, #tpu.memory_space<vmem>>, %arg5: memref<16x8xbf16, #tpu.memory_space<vmem>>, %arg6: memref<16x8xbf16, #tpu.memory_space<vmem>>) attributes {dimension_semantics = [#tpu.dimension_semantics<parallel>], iteration_bounds = array<i64: 1>, scalar_prefetch = 0 : i64, scratch_operands = 0 : i64, tpu.core_type = #tpu.core_type<tc>, window_params = [{transform_indices = @transform_0, window_bounds = array<i64: 16, 16>}, {pipeline_mode = #tpu.pipeline_mode<synchronous>, transform_indices = @transform_1, window_bounds = array<i64: 16, 32>}, {pipeline_mode = #tpu.pipeline_mode<synchronous>, transform_indices = @transform_2, window_bounds = array<i64: 1, 32>}, {pipeline_mode = #tpu.pipeline_mode<synchronous>, transform_indices = @transform_3, window_bounds = array<i64: 16, 8>}, {transform_indices = @transform_4, window_bounds = array<i64: 16, 8>}, {transform_indices = @transform_5, window_bounds = array<i64: 16, 8>}]} {
    %c0 = arith.constant 0 : index
    %c0_0 = arith.constant 0 : index
    %0 = vector.load %arg1[%c0, %c0_0] : memref<16x16xbf16, #tpu.memory_space<vmem>>, vector<16x16xbf16>
    %c0_1 = arith.constant 0 : index
    %c0_2 = arith.constant 0 : index
    %1 = vector.load %arg2[%c0_1, %c0_2] : memref<16x32xbf16, #tpu.memory_space<vmem>>, vector<16x32xbf16>
    %cst = arith.constant dense<0.000000e+00> : vector<16x32xf32>
    %2 = tpu.matmul %0, %1, %cst {dimension_numbers = #tpu.dot_dimension_numbers<[1], [0], [0], [1], [0, 0, 1, 1], [], []>} : vector<16x16xbf16>, vector<16x32xbf16>, vector<16x32xf32> -> vector<16x32xf32>
    %c0_3 = arith.constant 0 : index
    %c0_4 = arith.constant 0 : index
    %3 = vector.load %arg3[%c0_3, %c0_4] : memref<1x32xf32, #tpu.memory_space<vmem>>, vector<1x32xf32>
    %4 = vector.broadcast %3 : vector<1x32xf32> to vector<16x32xf32>
    %5 = arith.addf %2, %4 : vector<16x32xf32>
    %6 = arith.negf %5 : vector<16x32xf32>
    %7 = math.exp %6 : vector<16x32xf32>
    %cst_5 = arith.constant 1.000000e+00 : f32
    %8 = vector.broadcast %cst_5 : f32 to vector<16x32xf32>
    %9 = arith.addf %8, %7 : vector<16x32xf32>
    %10 = arith.divf %8, %9 : vector<16x32xf32>
    %11 = arith.truncf %10 : vector<16x32xf32> to vector<16x32xbf16>
    %c0_6 = arith.constant 0 : index
    %c0_7 = arith.constant 0 : index
    %12 = vector.load %arg4[%c0_6, %c0_7] : memref<16x8xbf16, #tpu.memory_space<vmem>>, vector<16x8xbf16>
    %13 = vector.extract_strided_slice %11 {offsets = [0, 0], sizes = [16, 16], strides = [1, 1]} : vector<16x32xbf16> to vector<16x16xbf16>
    %cst_8 = arith.constant dense<0.000000e+00> : vector<16x8xf32>
    %14 = tpu.matmul %13, %12, %cst_8 {dimension_numbers = #tpu.dot_dimension_numbers<[1], [0], [0], [1], [0, 0, 1, 1], [], []>} : vector<16x16xbf16>, vector<16x8xbf16>, vector<16x8xf32> -> vector<16x8xf32>
    %15 = arith.truncf %14 : vector<16x8xf32> to vector<16x8xbf16>
    %c0_9 = arith.constant 0 : index
    %c0_10 = arith.constant 0 : index
    %16 = vector.load %arg5[%c0_9, %c0_10] : memref<16x8xbf16, #tpu.memory_space<vmem>>, vector<16x8xbf16>
    tpu.vector_store %arg5[%c0_9, %c0_10], %15 {strides = array<i32>} : memref<16x8xbf16, #tpu.memory_space<vmem>>, vector<16x8xbf16>,
    %17 = vector.extract_strided_slice %11 {offsets = [0, 16], sizes = [16, 16], strides = [1, 1]} : vector<16x32xbf16> to vector<16x16xbf16>
    %cst_11 = arith.constant dense<0.000000e+00> : vector<16x8xf32>
    %18 = tpu.matmul %17, %12, %cst_11 {dimension_numbers = #tpu.dot_dimension_numbers<[1], [0], [0], [1], [0, 0, 1, 1], [], []>} : vector<16x16xbf16>, vector<16x8xbf16>, vector<16x8xf32> -> vector<16x8xf32>
    %19 = arith.truncf %18 : vector<16x8xf32> to vector<16x8xbf16>
    %c0_12 = arith.constant 0 : index
    %c0_13 = arith.constant 0 : index
    %20 = vector.load %arg6[%c0_12, %c0_13] : memref<16x8xbf16, #tpu.memory_space<vmem>>, vector<16x8xbf16>
    tpu.vector_store %arg6[%c0_12, %c0_13], %19 {strides = array<i32>} : memref<16x8xbf16, #tpu.memory_space<vmem>>, vector<16x8xbf16>,
    return
  }
  func.func @transform_0(%arg0: i32) -> (i32, i32) {
    %c0_i32 = arith.constant 0 : i32
    %c0_i32_0 = arith.constant 0 : i32
    return %arg0, %c0_i32 : i32, i32
  }
  func.func @transform_1(%arg0: i32) -> (i32, i32) {
    %c0_i32 = arith.constant 0 : i32
    %c0_i32_0 = arith.constant 0 : i32
    %c0_i32_1 = arith.constant 0 : i32
    return %c0_i32, %c0_i32_0 : i32, i32
  }
  func.func @transform_2(%arg0: i32) -> (i32, i32) {
    %c0_i32 = arith.constant 0 : i32
    %c0_i32_0 = arith.constant 0 : i32
    %c0_i32_1 = arith.constant 0 : i32
    return %c0_i32, %c0_i32_0 : i32, i32
  }
  func.func @transform_3(%arg0: i32) -> (i32, i32) {
    %c0_i32 = arith.constant 0 : i32
    %c0_i32_0 = arith.constant 0 : i32
    %c0_i32_1 = arith.constant 0 : i32
    return %c0_i32, %c0_i32_0 : i32, i32
  }
  func.func @transform_4(%arg0: i32) -> (i32, i32) {
    %c0_i32 = arith.constant 0 : i32
    %c0_i32_0 = arith.constant 0 : i32
    return %arg0, %c0_i32 : i32, i32
  }
  func.func @transform_5(%arg0: i32) -> (i32, i32) {
    %c0_i32 = arith.constant 0 : i32
    %c0_i32_0 = arith.constant 0 : i32
    return %arg0, %c0_i32 : i32, i32
  }
}

module attributes {stable_mosaic.version = 11 : i64} {
  func.func @_wavelet_kernel(%arg0: i32, %arg1: memref<16x8xbf16, #tpu.memory_space<vmem>>, %arg2: memref<8x16xbf16, #tpu.memory_space<vmem>>, %arg3: memref<1x16xf32, #tpu.memory_space<vmem>>, %arg4: memref<8x4xbf16, #tpu.memory_space<vmem>>, %arg5: memref<16x4xbf16, #tpu.memory_space<vmem>>, %arg6: memref<16x4xbf16, #tpu.memory_space<vmem>>) attributes {dimension_semantics = [#tpu.dimension_semantics<parallel>], iteration_bounds = array<i64: 1>, scalar_prefetch = 0 : i64, scratch_operands = 0 : i64, tpu.core_type = #tpu.core_type<tc>, window_params = [{transform_indices = @transform_0, window_bounds = array<i64: 16, 8>}, {pipeline_mode = #tpu.pipeline_mode<synchronous>, transform_indices = @transform_1, window_bounds = array<i64: 8, 16>}, {pipeline_mode = #tpu.pipeline_mode<synchronous>, transform_indices = @transform_2, window_bounds = array<i64: 1, 16>}, {pipeline_mode = #tpu.pipeline_mode<synchronous>, transform_indices = @transform_3, window_bounds = array<i64: 8, 4>}, {transform_indices = @transform_4, window_bounds = array<i64: 16, 4>}, {transform_indices = @transform_5, window_bounds = array<i64: 16, 4>}]} {
    %c0 = arith.constant 0 : index
    %c0_0 = arith.constant 0 : index
    %0 = vector.load %arg1[%c0, %c0_0] : memref<16x8xbf16, #tpu.memory_space<vmem>>, vector<16x8xbf16>
    %c0_1 = arith.constant 0 : index
    %c0_2 = arith.constant 0 : index
    %1 = vector.load %arg2[%c0_1, %c0_2] : memref<8x16xbf16, #tpu.memory_space<vmem>>, vector<8x16xbf16>
    %cst = arith.constant dense<0.000000e+00> : vector<16x16xf32>
    %2 = tpu.matmul %0, %1, %cst {dimension_numbers = #tpu.dot_dimension_numbers<[1], [0], [0], [1], [0, 0, 1, 1], [], []>} : vector<16x8xbf16>, vector<8x16xbf16>, vector<16x16xf32> -> vector<16x16xf32>
    %c0_3 = arith.constant 0 : index
    %c0_4 = arith.constant 0 : index
    %3 = vector.load %arg3[%c0_3, %c0_4] : memref<1x16xf32, #tpu.memory_space<vmem>>, vector<1x16xf32>
    %4 = vector.broadcast %3 : vector<1x16xf32> to vector<16x16xf32>
    %5 = arith.addf %2, %4 : vector<16x16xf32>
    %6 = arith.negf %5 : vector<16x16xf32>
    %7 = math.exp %6 : vector<16x16xf32>
    %cst_5 = arith.constant 1.000000e+00 : f32
    %8 = vector.broadcast %cst_5 : f32 to vector<16x16xf32>
    %9 = arith.addf %8, %7 : vector<16x16xf32>
    %10 = arith.divf %8, %9 : vector<16x16xf32>
    %11 = arith.truncf %10 : vector<16x16xf32> to vector<16x16xbf16>
    %c0_6 = arith.constant 0 : index
    %c0_7 = arith.constant 0 : index
    %12 = vector.load %arg4[%c0_6, %c0_7] : memref<8x4xbf16, #tpu.memory_space<vmem>>, vector<8x4xbf16>
    %13 = vector.extract_strided_slice %11 {offsets = [0, 0], sizes = [16, 8], strides = [1, 1]} : vector<16x16xbf16> to vector<16x8xbf16>
    %cst_8 = arith.constant dense<0.000000e+00> : vector<16x4xf32>
    %14 = tpu.matmul %13, %12, %cst_8 {dimension_numbers = #tpu.dot_dimension_numbers<[1], [0], [0], [1], [0, 0, 1, 1], [], []>} : vector<16x8xbf16>, vector<8x4xbf16>, vector<16x4xf32> -> vector<16x4xf32>
    %15 = arith.truncf %14 : vector<16x4xf32> to vector<16x4xbf16>
    %c0_9 = arith.constant 0 : index
    %c0_10 = arith.constant 0 : index
    %16 = vector.load %arg5[%c0_9, %c0_10] : memref<16x4xbf16, #tpu.memory_space<vmem>>, vector<16x4xbf16>
    tpu.vector_store %arg5[%c0_9, %c0_10], %15 {strides = array<i32>} : memref<16x4xbf16, #tpu.memory_space<vmem>>, vector<16x4xbf16>,
    %17 = vector.extract_strided_slice %11 {offsets = [0, 8], sizes = [16, 8], strides = [1, 1]} : vector<16x16xbf16> to vector<16x8xbf16>
    %cst_11 = arith.constant dense<0.000000e+00> : vector<16x4xf32>
    %18 = tpu.matmul %17, %12, %cst_11 {dimension_numbers = #tpu.dot_dimension_numbers<[1], [0], [0], [1], [0, 0, 1, 1], [], []>} : vector<16x8xbf16>, vector<8x4xbf16>, vector<16x4xf32> -> vector<16x4xf32>
    %19 = arith.truncf %18 : vector<16x4xf32> to vector<16x4xbf16>
    %c0_12 = arith.constant 0 : index
    %c0_13 = arith.constant 0 : index
    %20 = vector.load %arg6[%c0_12, %c0_13] : memref<16x4xbf16, #tpu.memory_space<vmem>>, vector<16x4xbf16>
    tpu.vector_store %arg6[%c0_12, %c0_13], %19 {strides = array<i32>} : memref<16x4xbf16, #tpu.memory_space<vmem>>, vector<16x4xbf16>,
    return
  }
  func.func @transform_0(%arg0: i32) -> (i32, i32) {
    %c0_i32 = arith.constant 0 : i32
    %c0_i32_0 = arith.constant 0 : i32
    return %arg0, %c0_i32 : i32, i32
  }
  func.func @transform_1(%arg0: i32) -> (i32, i32) {
    %c0_i32 = arith.constant 0 : i32
    %c0_i32_0 = arith.constant 0 : i32
    %c0_i32_1 = arith.constant 0 : i32
    return %c0_i32, %c0_i32_0 : i32, i32
  }
  func.func @transform_2(%arg0: i32) -> (i32, i32) {
    %c0_i32 = arith.constant 0 : i32
    %c0_i32_0 = arith.constant 0 : i32
    %c0_i32_1 = arith.constant 0 : i32
    return %c0_i32, %c0_i32_0 : i32, i32
  }
  func.func @transform_3(%arg0: i32) -> (i32, i32) {
    %c0_i32 = arith.constant 0 : i32
    %c0_i32_0 = arith.constant 0 : i32
    %c0_i32_1 = arith.constant 0 : i32
    return %c0_i32, %c0_i32_0 : i32, i32
  }
  func.func @transform_4(%arg0: i32) -> (i32, i32) {
    %c0_i32 = arith.constant 0 : i32
    %c0_i32_0 = arith.constant 0 : i32
    return %arg0, %c0_i32 : i32, i32
  }
  func.func @transform_5(%arg0: i32) -> (i32, i32) {
    %c0_i32 = arith.constant 0 : i32
    %c0_i32_0 = arith.constant 0 : i32
    return %arg0, %c0_i32 : i32, i32
  }
}

module attributes {stable_mosaic.version = 11 : i64} {
  func.func @_gates_kernel(%arg0: i32, %arg1: i32, %arg2: memref<1x128x8xbf16, #tpu.memory_space<vmem>>, %arg3: memref<1x8x256xbf16, #tpu.memory_space<vmem>>, %arg4: memref<1x1x256xf32, #tpu.memory_space<vmem>>, %arg5: memref<1x128x256xbf16, #tpu.memory_space<vmem>>) attributes {dimension_semantics = [#tpu.dimension_semantics<parallel>, #tpu.dimension_semantics<parallel>], iteration_bounds = array<i64: 3, 1>, scalar_prefetch = 0 : i64, scratch_operands = 0 : i64, tpu.core_type = #tpu.core_type<tc>, window_params = [{transform_indices = @transform_0, window_bounds = array<i64: 1, 128, 8>}, {transform_indices = @transform_1, window_bounds = array<i64: 1, 8, 256>}, {transform_indices = @transform_2, window_bounds = array<i64: 1, 1, 256>}, {transform_indices = @transform_3, window_bounds = array<i64: 1, 128, 256>}]} {
    %c0 = arith.constant 0 : index
    %c0_0 = arith.constant 0 : index
    %c0_1 = arith.constant 0 : index
    %0 = vector.load %arg2[%c0, %c0_0, %c0_1] : memref<1x128x8xbf16, #tpu.memory_space<vmem>>, vector<1x128x8xbf16>
    %1 = vector.shape_cast %0 : vector<1x128x8xbf16> to vector<128x8xbf16>
    %c0_2 = arith.constant 0 : index
    %c0_3 = arith.constant 0 : index
    %c0_4 = arith.constant 0 : index
    %2 = vector.load %arg3[%c0_2, %c0_3, %c0_4] : memref<1x8x256xbf16, #tpu.memory_space<vmem>>, vector<1x8x256xbf16>
    %3 = vector.shape_cast %2 : vector<1x8x256xbf16> to vector<8x256xbf16>
    %cst = arith.constant dense<0.000000e+00> : vector<128x256xf32>
    %4 = tpu.matmul %1, %3, %cst {dimension_numbers = #tpu.dot_dimension_numbers<[1], [0], [0], [1], [0, 0, 1, 1], [], []>} : vector<128x8xbf16>, vector<8x256xbf16>, vector<128x256xf32> -> vector<128x256xf32>
    %c0_5 = arith.constant 0 : index
    %c0_6 = arith.constant 0 : index
    %c0_7 = arith.constant 0 : index
    %5 = vector.load %arg4[%c0_5, %c0_6, %c0_7] : memref<1x1x256xf32, #tpu.memory_space<vmem>>, vector<1x1x256xf32>
    %6 = vector.shape_cast %5 : vector<1x1x256xf32> to vector<1x256xf32>
    %7 = vector.broadcast %6 : vector<1x256xf32> to vector<128x256xf32>
    %8 = arith.addf %4, %7 : vector<128x256xf32>
    %9 = arith.truncf %8 : vector<128x256xf32> to vector<128x256xbf16>
    %c0_8 = arith.constant 0 : index
    %c0_9 = arith.constant 0 : index
    %c0_10 = arith.constant 0 : index
    %10 = vector.load %arg5[%c0_8, %c0_9, %c0_10] : memref<1x128x256xbf16, #tpu.memory_space<vmem>>, vector<1x128x256xbf16>
    %11 = vector.shape_cast %10 : vector<1x128x256xbf16> to vector<128x256xbf16>
    %12 = vector.shape_cast %9 : vector<128x256xbf16> to vector<1x128x256xbf16>
    tpu.vector_store %arg5[%c0_8, %c0_9, %c0_10], %12 {strides = array<i32>} : memref<1x128x256xbf16, #tpu.memory_space<vmem>>, vector<1x128x256xbf16>,
    return
  }
  func.func @transform_0(%arg0: i32, %arg1: i32) -> (i32, i32, i32) {
    %c0_i32 = arith.constant 0 : i32
    %c0_i32_0 = arith.constant 0 : i32
    return %arg0, %arg1, %c0_i32 : i32, i32, i32
  }
  func.func @transform_1(%arg0: i32, %arg1: i32) -> (i32, i32, i32) {
    %c0_i32 = arith.constant 0 : i32
    %c0_i32_0 = arith.constant 0 : i32
    %c0_i32_1 = arith.constant 0 : i32
    return %arg0, %c0_i32, %c0_i32_0 : i32, i32, i32
  }
  func.func @transform_2(%arg0: i32, %arg1: i32) -> (i32, i32, i32) {
    %c0_i32 = arith.constant 0 : i32
    %c0_i32_0 = arith.constant 0 : i32
    %c0_i32_1 = arith.constant 0 : i32
    return %arg0, %c0_i32, %c0_i32_0 : i32, i32, i32
  }
  func.func @transform_3(%arg0: i32, %arg1: i32) -> (i32, i32, i32) {
    %c0_i32 = arith.constant 0 : i32
    %c0_i32_0 = arith.constant 0 : i32
    return %arg0, %arg1, %c0_i32 : i32, i32, i32
  }
}

module attributes {stable_mosaic.version = 11 : i64} {
  func.func @_lstm_recurrence_kernel(%arg0: i32, %arg1: i32, %arg2: memref<3xi32, #tpu.memory_space<smem>>, %arg3: memref<1x8x16x256xbf16, #tpu.memory_space<vmem>>, %arg4: memref<1x64x256xbf16, #tpu.memory_space<vmem>>, %arg5: memref<1x16x64xf32, #tpu.memory_space<vmem>>, %arg6: memref<16x64xf32, #tpu.memory_space<vmem>>, %arg7: memref<16x64xf32, #tpu.memory_space<vmem>>) attributes {dimension_semantics = [#tpu.dimension_semantics<parallel>, #tpu.dimension_semantics<arbitrary>], iteration_bounds = array<i64: 3, 1>, scalar_prefetch = 1 : i64, scratch_operands = 2 : i64, tpu.core_type = #tpu.core_type<tc>, window_params = [{transform_indices = @transform_0, window_bounds = array<i64: 1, 8, 16, 256>}, {transform_indices = @transform_1, window_bounds = array<i64: 1, 64, 256>}, {transform_indices = @transform_2, window_bounds = array<i64: 1, 16, 64>}]} {
    %c0_i32 = arith.constant 0 : i32
    %0 = arith.cmpi eq, %arg1, %c0_i32 : i32
    %1 = arith.extui %0 : i1 to i32
    %c0_i32_0 = arith.constant 0 : i32
    %2 = arith.cmpi ne, %1, %c0_i32_0 : i32
    scf.if %2 {
      %cst = arith.constant 0.000000e+00 : f32
      %21 = vector.broadcast %cst : f32 to vector<16x64xf32>
      %c0_16 = arith.constant 0 : index
      %c0_17 = arith.constant 0 : index
      %22 = vector.load %arg6[%c0_16, %c0_17] : memref<16x64xf32, #tpu.memory_space<vmem>>, vector<16x64xf32>
      tpu.vector_store %arg6[%c0_16, %c0_17], %21 {strides = array<i32>} : memref<16x64xf32, #tpu.memory_space<vmem>>, vector<16x64xf32>,
      %cst_18 = arith.constant 0.000000e+00 : f32
      %23 = vector.broadcast %cst_18 : f32 to vector<16x64xf32>
      %c0_19 = arith.constant 0 : index
      %c0_20 = arith.constant 0 : index
      %24 = vector.load %arg7[%c0_19, %c0_20] : memref<16x64xf32, #tpu.memory_space<vmem>>, vector<16x64xf32>
      tpu.vector_store %arg7[%c0_19, %c0_20], %23 {strides = array<i32>} : memref<16x64xf32, #tpu.memory_space<vmem>>, vector<16x64xf32>,
    } else {
    }
    %c8_i32 = arith.constant 8 : i32
    %3 = arith.muli %arg1, %c8_i32 : i32
    %4 = arith.index_cast %arg0 : i32 to index
    %5 = memref.load %arg2[%4] : memref<3xi32, #tpu.memory_space<smem>>
    %6 = arith.subi %5, %3 : i32
    %c0_i32_1 = arith.constant 0 : i32
    %c8_i32_2 = arith.constant 8 : i32
    %7 = arith.maxsi %c0_i32_1, %6 : i32
    %8 = arith.minsi %c8_i32_2, %7 : i32
    %c0 = arith.constant 0 : index
    %c0_3 = arith.constant 0 : index
    %c0_4 = arith.constant 0 : index
    %9 = vector.load %arg4[%c0, %c0_3, %c0_4] : memref<1x64x256xbf16, #tpu.memory_space<vmem>>, vector<1x64x256xbf16>
    %10 = vector.shape_cast %9 : vector<1x64x256xbf16> to vector<64x256xbf16>
    %c0_5 = arith.constant 0 : index
    %c0_6 = arith.constant 0 : index
    %11 = vector.load %arg6[%c0_5, %c0_6] : memref<16x64xf32, #tpu.memory_space<vmem>>, vector<16x64xf32>
    %c0_7 = arith.constant 0 : index
    %c0_8 = arith.constant 0 : index
    %12 = vector.load %arg7[%c0_7, %c0_8] : memref<16x64xf32, #tpu.memory_space<vmem>>, vector<16x64xf32>
    %c0_i32_9 = arith.constant 0 : i32
    %13 = arith.subi %8, %c0_i32_9 : i32
    %14 = arith.addi %c0_i32_9, %13 : i32
    %c1_i32 = arith.constant 1 : i32
    %15:2 = scf.for %arg8 = %c0_i32_9 to %14 step %c1_i32 iter_args(%arg9 = %11, %arg10 = %12) -> (vector<16x64xf32>, vector<16x64xf32>)  : i32 {
      %c0_16 = arith.constant 0 : index
      %21 = arith.index_cast %arg8 : i32 to index
      %c0_17 = arith.constant 0 : index
      %c0_18 = arith.constant 0 : index
      %22 = vector.load %arg3[%c0_16, %21, %c0_17, %c0_18] : memref<1x8x16x256xbf16, #tpu.memory_space<vmem>>, vector<1x1x16x256xbf16>
      %23 = vector.shape_cast %22 : vector<1x1x16x256xbf16> to vector<16x256xbf16>
      %24 = arith.extf %23 : vector<16x256xbf16> to vector<16x256xf32>
      %25 = arith.truncf %arg9 : vector<16x64xf32> to vector<16x64xbf16>
      %cst = arith.constant dense<0.000000e+00> : vector<16x256xf32>
      %26 = tpu.matmul %25, %10, %cst {dimension_numbers = #tpu.dot_dimension_numbers<[1], [0], [0], [1], [0, 0, 1, 1], [], []>} : vector<16x64xbf16>, vector<64x256xbf16>, vector<16x256xf32> -> vector<16x256xf32>
      %27 = arith.addf %24, %26 : vector<16x256xf32>
      %28 = arith.negf %27 : vector<16x256xf32>
      %29 = math.exp %28 : vector<16x256xf32>
      %cst_19 = arith.constant 1.000000e+00 : f32
      %30 = vector.broadcast %cst_19 : f32 to vector<16x256xf32>
      %31 = arith.addf %30, %29 : vector<16x256xf32>
      %32 = arith.divf %30, %31 : vector<16x256xf32>
      %33 = vector.extract_strided_slice %32 {offsets = [0, 0], sizes = [16, 64], strides = [1, 1]} : vector<16x256xf32> to vector<16x64xf32>
      %34 = vector.extract_strided_slice %32 {offsets = [0, 64], sizes = [16, 64], strides = [1, 1]} : vector<16x256xf32> to vector<16x64xf32>
      %35 = vector.extract_strided_slice %32 {offsets = [0, 128], sizes = [16, 64], strides = [1, 1]} : vector<16x256xf32> to vector<16x64xf32>
      %36 = vector.extract_strided_slice %32 {offsets = [0, 192], sizes = [16, 64], strides = [1, 1]} : vector<16x256xf32> to vector<16x64xf32>
      %cst_20 = arith.constant 2.000000e+00 : f32
      %37 = vector.broadcast %cst_20 : f32 to vector<16x64xf32>
      %38 = arith.mulf %37, %36 : vector<16x64xf32>
      %cst_21 = arith.constant 1.000000e+00 : f32
      %39 = vector.broadcast %cst_21 : f32 to vector<16x64xf32>
      %40 = arith.subf %38, %39 : vector<16x64xf32>
      %41 = arith.mulf %34, %arg10 : vector<16x64xf32>
      %42 = arith.mulf %33, %40 : vector<16x64xf32>
      %43 = arith.addf %41, %42 : vector<16x64xf32>
      %44 = math.tanh %43 : vector<16x64xf32>
      %45 = arith.mulf %35, %44 : vector<16x64xf32>
      scf.yield %45, %43 : vector<16x64xf32>, vector<16x64xf32>
    }
    %c0_10 = arith.constant 0 : index
    %c0_11 = arith.constant 0 : index
    %16 = vector.load %arg6[%c0_10, %c0_11] : memref<16x64xf32, #tpu.memory_space<vmem>>, vector<16x64xf32>
    tpu.vector_store %arg6[%c0_10, %c0_11], %15#0 {strides = array<i32>} : memref<16x64xf32, #tpu.memory_space<vmem>>, vector<16x64xf32>,
    %c0_12 = arith.constant 0 : index
    %c0_13 = arith.constant 0 : index
    %17 = vector.load %arg7[%c0_12, %c0_13] : memref<16x64xf32, #tpu.memory_space<vmem>>, vector<16x64xf32>
    tpu.vector_store %arg7[%c0_12, %c0_13], %15#1 {strides = array<i32>} : memref<16x64xf32, #tpu.memory_space<vmem>>, vector<16x64xf32>,
    %c0_i32_14 = arith.constant 0 : i32
    %18 = arith.cmpi eq, %arg1, %c0_i32_14 : i32
    %19 = arith.extui %18 : i1 to i32
    %c0_i32_15 = arith.constant 0 : i32
    %20 = arith.cmpi ne, %19, %c0_i32_15 : i32
    scf.if %20 {
      %c0_16 = arith.constant 0 : index
      %c0_17 = arith.constant 0 : index
      %21 = vector.load %arg6[%c0_16, %c0_17] : memref<16x64xf32, #tpu.memory_space<vmem>>, vector<16x64xf32>
      %c0_18 = arith.constant 0 : index
      %c0_19 = arith.constant 0 : index
      %c0_20 = arith.constant 0 : index
      %22 = vector.load %arg5[%c0_18, %c0_19, %c0_20] : memref<1x16x64xf32, #tpu.memory_space<vmem>>, vector<1x16x64xf32>
      %23 = vector.shape_cast %22 : vector<1x16x64xf32> to vector<16x64xf32>
      %24 = vector.shape_cast %21 : vector<16x64xf32> to vector<1x16x64xf32>
      tpu.vector_store %arg5[%c0_18, %c0_19, %c0_20], %24 {strides = array<i32>} : memref<1x16x64xf32, #tpu.memory_space<vmem>>, vector<1x16x64xf32>,
    } else {
    }
    return
  }
  func.func @transform_0(%arg0: i32, %arg1: i32, %arg2: memref<3xi32, #tpu.memory_space<smem>>) -> (i32, i32, i32, i32) {
    %c0_i32 = arith.constant 0 : i32
    %c0_i32_0 = arith.constant 0 : i32
    %c0_i32_1 = arith.constant 0 : i32
    return %arg0, %arg1, %c0_i32, %c0_i32_0 : i32, i32, i32, i32
  }
  func.func @transform_1(%arg0: i32, %arg1: i32, %arg2: memref<3xi32, #tpu.memory_space<smem>>) -> (i32, i32, i32) {
    %c0_i32 = arith.constant 0 : i32
    %c0_i32_0 = arith.constant 0 : i32
    %c0_i32_1 = arith.constant 0 : i32
    return %arg0, %c0_i32, %c0_i32_0 : i32, i32, i32
  }
  func.func @transform_2(%arg0: i32, %arg1: i32, %arg2: memref<3xi32, #tpu.memory_space<smem>>) -> (i32, i32, i32) {
    %c0_i32 = arith.constant 0 : i32
    %c0_i32_0 = arith.constant 0 : i32
    %c0_i32_1 = arith.constant 0 : i32
    return %arg0, %c0_i32, %c0_i32_0 : i32, i32, i32
  }
}

</mosaic_0001>

<bundles_post_ra>
// kernel: wavelet_lstm_forward.4
= control target key start
LH: loop header
LB: loop body
LE: loop exit
PB: predicated region body
PF: predicated region fallthrough
CT: control target
= control target key end

     0   :  { %v283_v0 = vmov 0.0   ;;  %vm284_vm0 = vmmov 0   ;;  %vm42_vm1 = vcmask 130048   ;;  %vm160_vm2 = vcmask 60416   ;;  %s347_s1 = inlined_call_operand.vmem [shape: bf16[16,32], index: 1, kind: input, shape index: {}]   ;;  %s348_s0 = inlined_call_operand.vmem [shape: bf16[16,16], index: 0, kind: input, shape index: {}]   ;;  %s349_s3 = inlined_call_operand.vmem [shape: bf16[16,8], index: 3, kind: input, shape index: {}]   ;;  %s350_s2 = inlined_call_operand.vmem [shape: f32[1,32], index: 2, kind: input, shape index: {}]   ;;  %s351_s4 = inlined_call_operand.vmem [shape: bf16[16,8], index: 4, kind: output, shape index: {0}]   ;;  %s352_s5 = inlined_call_operand.vmem [shape: bf16[16,8], index: 5, kind: output, shape index: {1}]  }
   0x1   :  { %251 = vmatprep.subr.bf16.mxu0 %v283_v0  ;;  %v272_v1 = vld [vmem:[%s347_s1] sm:$0xff]   ;;  %253 = vmatprep.mubr.msk.bf16.mxu0 %vm284_vm0, %v283_v0 }
   0x2   :  { %v273_v2 = vld [vmem:[%s348_s0] sm:$0xff]   ;;  %257 = vmatprep.subr.bf16.mxu1 %v283_v0  ;;  %259 = vmatprep.mubr.msk.bf16.mxu1 %vm284_vm0, %v283_v0  ;;  %s285_s0 = smov 112  }
   0x3   :  { %252 = vmatpush3.bf16.msra.mxu0 %v272_v1  ;;  %v274_v3 = vld [vmem:[%s349_s3] sm:$0xff]  }
   0x4   :  { %263 = vmatprep.subr.bf16.mxu0 %v283_v0  ;;  %258 = vmatpush3.bf16.msra.mxu1 %v274_v3  ;;  %v228_v4 = vld [vmem:[%s350_s2] ss:$0 sm:$0xff] }
   0x6   :  { %254 = vmatmul.mubr.msk.bf16.vlgmr.msra.gmra.mxu0 %vm42_vm1, %v273_v2 }
   0x7   :  { %265 = vmatprep.mubr.msk.bf16.mxu0 %vm284_vm0, %v283_v0  ;;  %264 = vmatpush3.bf16.msra.mxu0 %v274_v3 }
  0xc6   :  { %v80_v5 = vpop.f32.mrf.mxu0 }
  0xc7   :  { %v81_v6 = vadd.f32 %v228_v4, %v80_v5 }
  0xc8   :  { %v255_v7 = vpop.f32.mrf.mxu0 }
  0xc9   :  { %v232_v8 = vmul.f32 -1.442695, %v81_v6 }
  0xca   :  { %v83_v9 = vpop.f32.mrf.mxu0 }
  0xcb   :  { %275 = vpow2.f32 %v232_v8  ;;  %v84_v10 = vadd.f32 %v228_v4, %v83_v9 }
  0xcc   :  { %v256_v11 = vpop.f32.mrf.mxu0 }
  0xcd   :  { %v233_v12 = vmul.f32 -1.442695, %v84_v10 }
  0xcf   :  { %277 = vpow2.f32 %v233_v12 }
  0xd8   :  { %v276_v13 = vpop.eup %275 }
  0xd9   :  { %v93_v14 = vadd.f32 1.0, %v276_v13 }
  0xdb   :  { %279 = vrcp.f32 %v93_v14 }
  0xdc   :  { %v278_v15 = vpop.eup %277 }
  0xdd   :  { %v94_v16 = vadd.f32 1.0, %v278_v15 }
  0xdf   :  { %281 = vrcp.f32 %v94_v16 }
  0xe8   :  { %v280_v17 = vpop.eup %279 }
  0xec   :  { %v282_v18 = vpop.eup %281 }
  0xed   :  { %v99_v19 = vpack.c.bf16 %v282_v18, %v280_v17 }
  0xef   :  { %260 = vmatmul.mubr.msk.bf16.vlgmr.msra.gmra.mxu1 %vm42_vm1, %v99_v19  ;;  %164 = vrot.lane.b32.xlu0 %v99_v19, %s285_s0 }
 0x161   :  { %v165_v20 = vpop.permute.xlu0 %164 }
 0x162   :  { %266 = vmatmul.mubr.msk.bf16.vlgmr.msra.gmra.mxu0 %vm42_vm1, %v165_v20 }
 0x1af   :  { %v145_v21 = vpop.f32.mrf.mxu1 }
 0x1b0   :  { %v241_v22 = vpack.c.bf16 %v145_v21, %v145_v21 }
 0x1b1   :  { %v261_v23 = vpop.f32.mrf.mxu1 }
 0x1b2   :  { %161 = vst.msk [vmem:[%s351_s4] sm:$0xf] %vm160_vm2, %v241_v22 }
 0x1b3   :  { %v148_v24 = vpop.f32.mrf.mxu1 }
 0x1b4   :  { %v242_v25 = vpack.c.bf16 %v148_v24, %v148_v24 }
 0x1b5   :  { %v262_v26 = vpop.f32.mrf.mxu1 }
 0x1b6   :  { %162 = vst.msk [vmem:[%s351_s4 + $0x4] sm:$0xf] %vm160_vm2, %v242_v25 }
 0x222   :  { %v203_v27 = vpop.f32.mrf.mxu0 }
 0x223   :  { %v243_v28 = vpack.c.bf16 %v203_v27, %v203_v27 }
 0x224   :  { %v267_v29 = vpop.f32.mrf.mxu0 }
 0x225   :  { %218 = vst.msk [vmem:[%s352_s5] sm:$0xf] %vm160_vm2, %v243_v28 }
 0x226   :  { %v206_v30 = vpop.f32.mrf.mxu0 }
 0x227   :  { %v244_v31 = vpack.c.bf16 %v206_v30, %v206_v30 }
 0x228   :  { %v268_v32 = vpop.f32.mrf.mxu0 }
 0x229   :  { %219 = vst.msk [vmem:[%s352_s5 + $0x4] sm:$0xf] %vm160_vm2, %v244_v31 }

// kernel: wavelet_lstm_forward.5
= control target key start
LH: loop header
LB: loop body
LE: loop exit
PB: predicated region body
PF: predicated region fallthrough
CT: control target
= control target key end

     0   :  { %vm39_vm0 = vcmask 1043456   ;;  %v272_v0 = vmov 0.0   ;;  %vm273_vm1 = vmmov 0   ;;  %vm35_vm2 = vcmask 64512   ;;  %s338_s1 = inlined_call_operand.vmem [shape: bf16[8,16], index: 1, kind: input, shape index: {}]   ;;  %s339_s0 = inlined_call_operand.vmem [shape: bf16[16,8], index: 0, kind: input, shape index: {}]   ;;  %s340_s3 = inlined_call_operand.vmem [shape: bf16[8,4], index: 3, kind: input, shape index: {}]   ;;  %s341_s2 = inlined_call_operand.vmem [shape: f32[1,16], index: 2, kind: input, shape index: {}]   ;;  %s342_s4 = inlined_call_operand.vmem [shape: bf16[16,4], index: 4, kind: output, shape index: {0}]   ;;  %s343_s5 = inlined_call_operand.vmem [shape: bf16[16,4], index: 5, kind: output, shape index: {1}]  }
   0x1   :  { %242 = vmatprep.subr.bf16.mxu0 %v272_v0  ;;  %v22_v1 = vld [vmem:[%s338_s1] sm:$0xf]  ;;  %244 = vmatprep.mubr.msk.bf16.mxu0 %vm273_vm1, %v272_v0  ;;  %vm153_vm3 = vcmask 27648  }
   0x2   :  { %v41_v2 = vsel %vm39_vm0, %v22_v1, 0  ;;  %v263_v3 = vld [vmem:[%s339_s0] sm:$0xff]   ;;  %248 = vmatprep.subr.bf16.mxu1 %v272_v0  ;;  %250 = vmatprep.mubr.msk.bf16.mxu1 %vm273_vm1, %v272_v0  ;;  %s274_s0 = smov 120  }
   0x3   :  { %243 = vmatpush3.bf16.msra.mxu0 %v41_v2  ;;  %v97_v4 = vld [vmem:[%s340_s3] sm:$0xf] }
   0x4   :  { %254 = vmatprep.subr.bf16.mxu0 %v272_v0  ;;  %v102_v5 = vsel %vm39_vm0, %v97_v4, 0  ;;  %v221_v6 = vld [vmem:[%s341_s2] ss:$0 sm:$0xff] }
   0x5   :  { %249 = vmatpush3.bf16.msra.mxu1 %v102_v5 }
   0x6   :  { %245 = vmatmul.mubr.msk.bf16.vlgmr.msra.gmra.mxu0 %vm35_vm2, %v263_v3 }
   0x7   :  { %256 = vmatprep.mubr.msk.bf16.mxu0 %vm273_vm1, %v272_v0  ;;  %255 = vmatpush3.bf16.msra.mxu0 %v102_v5 }
  0xc6   :  { %v77_v7 = vpop.f32.mrf.mxu0 }
  0xc7   :  { %v78_v8 = vadd.f32 %v221_v6, %v77_v7 }
  0xc8   :  { %v246_v9 = vpop.f32.mrf.mxu0 }
  0xc9   :  { %v224_v10 = vmul.f32 -1.442695, %v78_v8 }
  0xca   :  { %v80_v11 = vpop.f32.mrf.mxu0 }
  0xcb   :  { %264 = vpow2.f32 %v224_v10  ;;  %v81_v12 = vadd.f32 %v221_v6, %v80_v11 }
  0xcc   :  { %v247_v13 = vpop.f32.mrf.mxu0 }
  0xcd   :  { %v225_v14 = vmul.f32 -1.442695, %v81_v12 }
  0xcf   :  { %266 = vpow2.f32 %v225_v14 }
  0xd8   :  { %v265_v15 = vpop.eup %264 }
  0xd9   :  { %v90_v16 = vadd.f32 1.0, %v265_v15 }
  0xdb   :  { %268 = vrcp.f32 %v90_v16 }
  0xdc   :  { %v267_v17 = vpop.eup %266 }
  0xdd   :  { %v91_v18 = vadd.f32 1.0, %v267_v17 }
  0xdf   :  { %270 = vrcp.f32 %v91_v18 }
  0xe8   :  { %v269_v19 = vpop.eup %268 }
  0xec   :  { %v271_v20 = vpop.eup %270 }
  0xed   :  { %v96_v21 = vpack.c.bf16 %v271_v20, %v269_v19 }
  0xef   :  { %251 = vmatmul.mubr.msk.bf16.vlgmr.msra.gmra.mxu1 %vm35_vm2, %v96_v21  ;;  %157 = vrot.lane.b32.xlu0 %v96_v21, %s274_s0 }
 0x161   :  { %v158_v22 = vpop.permute.xlu0 %157 }
 0x162   :  { %257 = vmatmul.mubr.msk.bf16.vlgmr.msra.gmra.mxu0 %vm35_vm2, %v158_v22 }
 0x1af   :  { %v138_v23 = vpop.f32.mrf.mxu1 }
 0x1b0   :  { %v232_v24 = vpack.c.bf16 %v138_v23, %v138_v23 }
 0x1b1   :  { %v252_v25 = vpop.f32.mrf.mxu1 }
 0x1b2   :  { %154 = vst.msk [vmem:[%s342_s4] sm:$0xf] %vm153_vm3, %v232_v24 }
 0x1b3   :  { %v141_v26 = vpop.f32.mrf.mxu1 }
 0x1b4   :  { %v233_v27 = vpack.c.bf16 %v141_v26, %v141_v26 }
 0x1b5   :  { %v253_v28 = vpop.f32.mrf.mxu1 }
 0x1b6   :  { %155 = vst.msk [vmem:[%s342_s4 + $0x4] sm:$0xf] %vm153_vm3, %v233_v27 }
 0x222   :  { %v196_v29 = vpop.f32.mrf.mxu0 }
 0x223   :  { %v234_v30 = vpack.c.bf16 %v196_v29, %v196_v29 }
 0x224   :  { %v258_v31 = vpop.f32.mrf.mxu0 }
 0x225   :  { %211 = vst.msk [vmem:[%s343_s5] sm:$0xf] %vm153_vm3, %v234_v30 }
 0x226   :  { %v199_v32 = vpop.f32.mrf.mxu0 }
 0x227   :  { %v235_v33 = vpack.c.bf16 %v199_v32, %v199_v32 }
 0x228   :  { %v259_v34 = vpop.f32.mrf.mxu0 }
 0x229   :  { %212 = vst.msk [vmem:[%s343_s5 + $0x4] sm:$0xf] %vm153_vm3, %v235_v33 }

// kernel: wavelet_lstm_forward.6
= control target key start
LH: loop header
LB: loop body
LE: loop exit
PB: predicated region body
PF: predicated region fallthrough
CT: control target
= control target key end

     0   :  { %s848_s12 = smov 0   ;;  %s850_s13 = smov 0   ;;  %s965_s0 = inlined_call_operand.vmem [shape: bf16[3,128,8], index: 0, kind: input, shape index: {}]   ;;  %s966_s1 = inlined_call_operand.vmem [shape: bf16[3,8,256], index: 1, kind: input, shape index: {}]   ;;  %s967_s2 = inlined_call_operand.vmem [shape: f32[3,1,256], index: 2, kind: input, shape index: {}]   ;;  %s968_s3 = inlined_call_operand.vmem [shape: bf16[3,128,256], index: 3, kind: output, shape index: {}]  }
   0x1   :  { %s852_s14 = smov 0  }
   0x2 LB: > { %s25_s15 = sadd.s32 1, %s821_s13  ;;  %p702_p0 = scmp.ge.s32.totalorder %s825_s14, 1  ;;  %s825_s14 = sphi %s852_s14, %s13_s14   ;;  %s821_s13 = sphi %s850_s13, %s970_s13   ;;  %s817_s12 = sphi %s848_s12, %s969_s12  }
   0x3   : > { %p27_p1 = scmp.ge.s32.totalorder %s25_s15, 3  ;;  %p177_p2 = scmp.lt.s32.totalorder %s825_s14, 4 }
   0x5   : > { %s972_s15 = smov (%p27_p1, %s25_s15), 0  ;;  %p178_p3 = pnand %p702_p0, %p177_p2 }
   0x6   : > { %p220_p4 = scmp.lt.s32.totalorder (!%p178_p3), %s817_s12, 2 }
   0x7   : > { %181 = sbr.rel (%p178_p3) target bundleno = 250 (0xfa), region = 32 }
   0xc   : > { %v827_v0 = vmov 0   ;;  %s974_s12 = smov (!%p220_p4, %s817_s12), 2  ;;  %vm349_vm0 = vcmask 1043456   ;;  %vm324_vm1 = vcmask 64512   ;;  %v269_v13 = vlaneseq }
   0xd   : > { %388 = vmatprep.mubr.bf16.mxu0 %v827_v0  ;;  %428 = vmatprep.mubr.bf16.mxu1 %v827_v0  ;;  %s747_s16 = sshll.u32 %s974_s12, 6  ;;  %s748_s17 = sshll.u32 %s974_s12, 3 }
   0xe   : > { %s873_s20 = scalar_lea.vmem %s965_s0, %s747_s16  ;;  %s233_s23 = scalar_lea.vmem %s966_s1, %s748_s17  ;;  %v270_v14 = vshrl.u32 %v269_v13, 7 }
   0xf   : > { %v266_v1 = vld [vmem:[%s233_s23] sm:$0xff]  ;;  %v797_v7 = vld [vmem:[%s873_s20 + $0x8] sm:$0xff]   ;;  %v799_v9 = vld [vmem:[%s873_s20 + $0x10] sm:$0xff]   ;;  %s707_s24 = sshll.u32 %s974_s12, 1  ;;  %s749_s28 = sshll.u32 %s974_s12, 7 }
  0x10   : > { %v719_v2 = vcombine.high %v266_v1, %v266_v1  ;;  %v718_v3 = vcombine.low %v266_v1, %v266_v1  ;;  %v795_v4 = vld [vmem:[%s873_s20] sm:$0xff]   ;;  %v798_v8 = vld [vmem:[%s873_s20 + $0x28] sm:$0xff]   ;;  %v800_v10 = vld [vmem:[%s873_s20 + $0x30] sm:$0xff]   ;;  %s237_s27 = scalar_lea.vmem %s967_s2, %s707_s24  ;;  %v271_v15 = vsub.s32 0, %v270_v14  ;;  %v275_v16 = vsub.s32 1, %v270_v14  ;;  %s910_s4 = scalar_lea.vmem %s968_s3, %s749_s28 }
  0x11   : > { %v796_v6 = vld [vmem:[%s873_s20 + $0x20] sm:$0xff]   ;;  %v801_v11 = vld [vmem:[%s873_s20 + $0x18] sm:$0xff]  }
  0x12   : > { %720 = vmatprep.subr.msk.bf16.mxu0 %vm349_vm0, %v719_v2  ;;  %766 = vmatprep.subr.msk.bf16.mxu1 %vm349_vm0, %v719_v2  ;;  %v351_v5 = vsel %vm349_vm0, %v718_v3, 0  ;;  %v802_v12 = vld [vmem:[%s873_s20 + $0x38] sm:$0xff]   ;;  %v267_v17 = vld [vmem:[%s237_s27] sm:$0x3] }
  0x13   : > { %371 = vmatpush1.bf16.msra.mxu0 %v351_v5  ;;  %767 = vmatpush1.bf16.msra.mxu1 %v351_v5  ;;  %v898_v18 = vrot.slane %v267_v17, %v271_v15  ;;  %v900_v19 = vrot.slane %v267_v17, %v275_v16 }
  0x16   : > { %721 = vmatmul.mubr.msk.bf16.vlgmr.msra.gmra.mxu0 %vm324_vm1, %v795_v4  ;;  %725 = vmatmul.mubr.msk.bf16.vlgmr.msra.gmra.mxu1 %vm324_vm1, %v796_v6 }
  0x17   : > { %398 = vmatprep.mubr.bf16.mxu0 %v827_v0  ;;  %438 = vmatprep.mubr.bf16.mxu1 %v827_v0 }
  0x1e   : > { %722 = vmatmul.mubr.msk.bf16.gmra.mxu0 %vm324_vm1, %v797_v7  ;;  %726 = vmatmul.mubr.msk.bf16.gmra.mxu1 %vm324_vm1, %v798_v8 }
  0x1f   : > { %408 = vmatprep.mubr.bf16.mxu0 %v827_v0  ;;  %448 = vmatprep.mubr.bf16.mxu1 %v827_v0 }
  0x26   : > { %723 = vmatmul.mubr.msk.bf16.gmra.mxu0 %vm324_vm1, %v799_v9  ;;  %727 = vmatmul.mubr.msk.bf16.gmra.mxu1 %vm324_vm1, %v800_v10 }
  0x27   : > { %418 = vmatprep.mubr.bf16.mxu0 %v827_v0  ;;  %458 = vmatprep.mubr.bf16.mxu1 %v827_v0 }
  0x2e   : > { %724 = vmatmul.mubr.msk.bf16.gmra.mxu0 %vm324_vm1, %v801_v11  ;;  %728 = vmatmul.mubr.msk.bf16.gmra.mxu1 %vm324_vm1, %v802_v12 }
  0xd6   : > { %v390_v20 = vpop.f32.mrf.mxu0  ;;  %v430_v21 = vpop.f32.mrf.mxu1 }
  0xd7   : > { %v391_v24 = vadd.f32 %v390_v20, %v898_v18  ;;  %v431_v25 = vadd.f32 %v430_v21, %v898_v18 }
  0xd8   : > { %v392_v22 = vpop.f32.mrf.mxu0  ;;  %v432_v23 = vpop.f32.mrf.mxu1 }
  0xd9   : > { %v393_v26 = vadd.f32 %v392_v22, %v900_v19  ;;  %v433_v27 = vadd.f32 %v432_v23, %v900_v19 }
  0xda   : > { %v394_v28 = vpop.f32.mrf.mxu0  ;;  %v434_v29 = vpop.f32.mrf.mxu1 }
  0xdb   : > { %v750_v30 = vpack.c.bf16 %v393_v26, %v391_v24  ;;  %v758_v31 = vpack.c.bf16 %v433_v27, %v431_v25  ;;  %v395_v34 = vadd.f32 %v394_v28, %v898_v18  ;;  %v435_v35 = vadd.f32 %v434_v29, %v898_v18 }
  0xdc   : > { %v396_v32 = vpop.f32.mrf.mxu0  ;;  %v436_v33 = vpop.f32.mrf.mxu1 }
  0xdd   : > { %565 = vst [vmem:[%s910_s4] sm:$0xff] %v750_v30  ;;  %573 = vst [vmem:[%s910_s4 + $0x40] sm:$0xff] %v758_v31  ;;  %v397_v36 = vadd.f32 %v396_v32, %v900_v19  ;;  %v437_v37 = vadd.f32 %v436_v33, %v900_v19 }
  0xde   : > { %v400_v38 = vpop.f32.mrf.mxu0  ;;  %v440_v39 = vpop.f32.mrf.mxu1 }
  0xdf   : > { %v751_v40 = vpack.c.bf16 %v397_v36, %v395_v34  ;;  %v759_v41 = vpack.c.bf16 %v437_v37, %v435_v35  ;;  %v401_v44 = vadd.f32 %v400_v38, %v898_v18  ;;  %v441_v45 = vadd.f32 %v440_v39, %v898_v18 }
  0xe0   : > { %v402_v42 = vpop.f32.mrf.mxu0  ;;  %v442_v43 = vpop.f32.mrf.mxu1 }
  0xe1   : > { %566 = vst [vmem:[%s910_s4 + $0x8] sm:$0xff] %v751_v40  ;;  %574 = vst [vmem:[%s910_s4 + $0x48] sm:$0xff] %v759_v41  ;;  %v403_v46 = vadd.f32 %v402_v42, %v900_v19  ;;  %v443_v47 = vadd.f32 %v442_v43, %v900_v19 }
  0xe2   : > { %v404_v48 = vpop.f32.mrf.mxu0  ;;  %v444_v49 = vpop.f32.mrf.mxu1 }
  0xe3   : > { %v752_v50 = vpack.c.bf16 %v403_v46, %v401_v44  ;;  %v760_v51 = vpack.c.bf16 %v443_v47, %v441_v45  ;;  %v405_v54 = vadd.f32 %v404_v48, %v898_v18  ;;  %v445_v55 = vadd.f32 %v444_v49, %v898_v18 }
  0xe4   : > { %v406_v52 = vpop.f32.mrf.mxu0  ;;  %v446_v53 = vpop.f32.mrf.mxu1 }
  0xe5   : > { %567 = vst [vmem:[%s910_s4 + $0x10] sm:$0xff] %v752_v50  ;;  %575 = vst [vmem:[%s910_s4 + $0x50] sm:$0xff] %v760_v51  ;;  %v407_v56 = vadd.f32 %v406_v52, %v900_v19  ;;  %v447_v57 = vadd.f32 %v446_v53, %v900_v19 }
  0xe6   : > { %v410_v58 = vpop.f32.mrf.mxu0  ;;  %v450_v59 = vpop.f32.mrf.mxu1 }
  0xe7   : > { %v753_v60 = vpack.c.bf16 %v407_v56, %v405_v54  ;;  %v761_v61 = vpack.c.bf16 %v447_v57, %v445_v55  ;;  %v411_v0 = vadd.f32 %v410_v58, %v898_v18  ;;  %v451_v1 = vadd.f32 %v450_v59, %v898_v18 }
  0xe8   : > { %v412_v62 = vpop.f32.mrf.mxu0  ;;  %v452_v63 = vpop.f32.mrf.mxu1 }
  0xe9   : > { %568 = vst [vmem:[%s910_s4 + $0x18] sm:$0xff] %v753_v60  ;;  %576 = vst [vmem:[%s910_s4 + $0x58] sm:$0xff] %v761_v61  ;;  %v413_v2 = vadd.f32 %v412_v62, %v900_v19  ;;  %v453_v3 = vadd.f32 %v452_v63, %v900_v19 }
  0xea   : > { %v414_v4 = vpop.f32.mrf.mxu0  ;;  %v454_v5 = vpop.f32.mrf.mxu1 }
  0xeb   : > { %v754_v6 = vpack.c.bf16 %v413_v2, %v411_v0  ;;  %v762_v7 = vpack.c.bf16 %v453_v3, %v451_v1  ;;  %v415_v10 = vadd.f32 %v414_v4, %v898_v18  ;;  %v455_v11 = vadd.f32 %v454_v5, %v898_v18 }
  0xec   : > { %v416_v8 = vpop.f32.mrf.mxu0  ;;  %v456_v9 = vpop.f32.mrf.mxu1 }
  0xed   : > { %569 = vst [vmem:[%s910_s4 + $0x20] sm:$0xff] %v754_v6  ;;  %577 = vst [vmem:[%s910_s4 + $0x60] sm:$0xff] %v762_v7  ;;  %v417_v12 = vadd.f32 %v416_v8, %v900_v19  ;;  %v457_v13 = vadd.f32 %v456_v9, %v900_v19 }
  0xee   : > { %v420_v14 = vpop.f32.mrf.mxu0  ;;  %v460_v15 = vpop.f32.mrf.mxu1 }
  0xef   : > { %v755_v16 = vpack.c.bf16 %v417_v12, %v415_v10  ;;  %v763_v17 = vpack.c.bf16 %v457_v13, %v455_v11  ;;  %v421_v22 = vadd.f32 %v420_v14, %v898_v18  ;;  %v461_v23 = vadd.f32 %v460_v15, %v898_v18 }
  0xf0   : > { %v422_v20 = vpop.f32.mrf.mxu0  ;;  %v462_v21 = vpop.f32.mrf.mxu1 }
  0xf1   : > { %570 = vst [vmem:[%s910_s4 + $0x28] sm:$0xff] %v755_v16  ;;  %578 = vst [vmem:[%s910_s4 + $0x68] sm:$0xff] %v763_v17  ;;  %v423_v24 = vadd.f32 %v422_v20, %v900_v19  ;;  %v463_v25 = vadd.f32 %v462_v21, %v900_v19 }
  0xf2   : > { %v424_v26 = vpop.f32.mrf.mxu0  ;;  %v464_v27 = vpop.f32.mrf.mxu1 }
  0xf3   : > { %v756_v28 = vpack.c.bf16 %v423_v24, %v421_v22  ;;  %v764_v29 = vpack.c.bf16 %v463_v25, %v461_v23  ;;  %v425_v32 = vadd.f32 %v424_v26, %v898_v18  ;;  %v465_v33 = vadd.f32 %v464_v27, %v898_v18 }
  0xf4   : > { %v426_v30 = vpop.f32.mrf.mxu0  ;;  %v466_v31 = vpop.f32.mrf.mxu1 }
  0xf5   : > { %571 = vst [vmem:[%s910_s4 + $0x30] sm:$0xff] %v756_v28  ;;  %579 = vst [vmem:[%s910_s4 + $0x70] sm:$0xff] %v764_v29  ;;  %v427_v34 = vadd.f32 %v426_v30, %v900_v19  ;;  %v467_v35 = vadd.f32 %v466_v31, %v900_v19 }
  0xf7   : > { %v757_v36 = vpack.c.bf16 %v427_v34, %v425_v32  ;;  %v765_v37 = vpack.c.bf16 %v467_v35, %v465_v33 }
  0xf9   : > { %572 = vst [vmem:[%s910_s4 + $0x38] sm:$0xff] %v757_v36  ;;  %580 = vst [vmem:[%s910_s4 + $0x78] sm:$0xff] %v765_v37 }
  0xfa PF: > { %s13_s14 = sadd.s32 1, %s825_s14   ;;  %s969_s12 = smov %s821_s13 }
  0xfb   : > { %p10_p5 = scmp.ge.s32.totalorder %s13_s14, 5   ;;  %s970_s13 = smov %s972_s15 }
  0xfd   :  { %12 = sbr.rel (!%p10_p5) target bundleno = 2 (0x2), region = 68 }

// kernel: wavelet_lstm_forward.7
= control target key start
LH: loop header
LB: loop body
LE: loop exit
PB: predicated region body
PF: predicated region fallthrough
CT: control target
= control target key end

     0   :  { %s983_s0 = inlined_call_operand.vmem [shape: s32[3], index: 0, kind: input, shape index: {}]   ;;  %s984_s1 = inlined_call_operand.vmem [shape: bf16[3,8,16,256], index: 1, kind: input, shape index: {}]   ;;  %s985_s2 = inlined_call_operand.vmem [shape: bf16[3,64,256], index: 2, kind: input, shape index: {}]   ;;  %s986_s3 = inlined_call_operand.vmem [shape: f32[3,16,64], index: 3, kind: output, shape index: {}]  }
   0x1   :  { %s8_s14 = sshll.u32 %s983_s0, 4  ;;  %s9_s14 = int_to_ptr.vmem [resolvable:$true] %s8_s14 }
   0x2   :  { %s697_s15 = scalar_lea.vmem %s9_s14, 16  ;;  %p702_p1 = scmp.lt.s32.totalorder %s9_s14, %s9_s14 }
   0x3   :  { %p698_p0 = scmp.ne.s32.totalorder %s9_s14, %s697_s15  ;;  %p703_p2 = scmp.lt.s32.totalorder %s697_s15, %s697_s15 }
   0x5   :  { %p704_p3 = por %p703_p2, %p702_p1 }
   0x7   :  { %p705_p4 = pnand %p704_p3, %p698_p0 }
   0x9   :  { %708 = shalt.err (!%p705_p4)  }
   0xa   :  { %s807_s16 = smov [#allocation5]  }
   0xb   :  { %11 = dma.vmem_to_smem %s9_s14, 16, %s807_s16, [#allocation4] }
   0xc   :  { %757 = dma.done.wait [#allocation4], 16 }
   0xd   :  { %758 = vsyncadd [#allocation4], 4294967280 }
   0xe   :  { %13 = sfence }
   0xf   :  { %s834_s17 = smov 0   ;;  %s836_s18 = smov 0  }
  0x10   :  { %s838_s19 = smov 0  }
  0x11 LB: > { %s31_s0 = sadd.s32 1, %s765_s18  ;;  %p539_p5 = scmp.ge.s32.totalorder %s769_s19, 1  ;;  %s769_s19 = sphi %s838_s19, %s19_s19   ;;  %s765_s18 = sphi %s836_s18, %s1000_s18   ;;  %s761_s17 = sphi %s834_s17, %s999_s17  }
  0x12   : > { %p33_p6 = scmp.ge.s32.totalorder %s31_s0, 3  ;;  %p149_p7 = scmp.lt.s32.totalorder %s769_s19, 4 }
  0x14   : > { %s1002_s0 = smov (%p33_p6, %s31_s0), 0  ;;  %p150_p8 = pnand %p539_p5, %p149_p7 }
  0x15   : > { %p182_p9 = scmp.lt.s32.totalorder (!%p150_p8), %s761_s17, 2  ;;  %s213_s20 = sld [smem:[#allocation5 + %s761_s17]] (!%p150_p8) }
  0x16   : > { %153 = sbr.rel (%p150_p8) target bundleno = 672 (0x2a0), region = 28 }
  0x1b   : > { %vm207_vm0 = vcmask 523264   ;;  %v808_v0 = vmov 0.0   ;;  %s1004_s17 = smov (!%p182_p9, %s761_s17), 2  ;;  %p215_p10 = scmp.gt.s32.totalorder %s213_s20, 0 }
  0x1c   : > { %208 = vst.msk [vmem:[#allocation2] sm:$0xff] %vm207_vm0, %v808_v0  ;;  %209 = vst.msk [vmem:[#allocation2 + $0x8] sm:$0xff] %vm207_vm0, %v808_v0  ;;  %s571_s21 = sshll.u32 %s1004_s17, 7  ;;  %s572_s22 = sshll.u32 %s1004_s17, 6 }
  0x1d   : > { %210 = vst.msk [vmem:[#allocation3] sm:$0xff] %vm207_vm0, %v808_v0  ;;  %211 = vst.msk [vmem:[#allocation3 + $0x8] sm:$0xff] %vm207_vm0, %v808_v0  ;;  %s859_s25 = scalar_lea.vmem %s984_s1, %s571_s21  ;;  %s196_s28 = scalar_lea.vmem %s985_s2, %s572_s22 }
  0x1e   : > { %s573_s29 = sshll.u32 %s1004_s17, 4  ;;  %v864_v1 = vld [vmem:[%s196_s28] sm:$0xff]  ;;  %v866_v2 = vld [vmem:[%s196_s28 + $0x8] sm:$0xff]  ;;  %v868_v3 = vld [vmem:[%s196_s28 + $0x10] sm:$0xff]  ;;  %p546_p11 = scmp.lt.s32.totalorder %s213_s20, 8 }
  0x1f   : > { %s873_s5 = scalar_lea.vmem %s986_s3, %s573_s29  ;;  %v875_v4 = vld [vmem:[%s196_s28 + $0x18] sm:$0xff]  ;;  %v877_v5 = vld [vmem:[%s196_s28 + $0x20] sm:$0xff]  ;;  %v879_v6 = vld [vmem:[%s196_s28 + $0x28] sm:$0xff]  ;;  %s1006_s20 = smov (!%p215_p10, %s213_s20), 0 }
  0x20   : > { %v881_v8 = vld [vmem:[%s196_s28 + $0x30] sm:$0xff]  ;;  %v883_v9 = vld [vmem:[%s196_s28 + $0x38] sm:$0xff]  ;;  %s1008_s20 = smov (!%p546_p11, %s1006_s20), 8 }
  0x21   : > { %p551_p12 = scmp.le.s32.totalorder %s1008_s20, 0 }
  0x22   : > { %s904_s6 = smov (!%p551_p12), 0  }
  0x23   : > { %v227_v7 = vld [vmem:[#allocation2] sm:$0xff]   ;;  %v228_v10 = vld [vmem:[#allocation2 + $0x8] sm:$0xff]   ;;  %490 = sbr.rel (%p551_p12) target bundleno = 663 (0x297), region = 71 }
  0x24   : > { %v229_v11 = vld [vmem:[#allocation3] sm:$0xff]   ;;  %v230_v12 = vld [vmem:[#allocation3 + $0x8] sm:$0xff]   ;;  %v989_v15 = vmov %v228_v10  ;;  %v990_v16 = vmov %v227_v7 }
  0x25   : > { %v987_v13 = vmov %v230_v12  ;;  %v988_v14 = vmov %v229_v11 }
  0x28 LB: >> { %v561_v17 = vcombine.high %v881_v8, %v883_v9  ;;  %v560_v18 = vcombine.low %v881_v8, %v883_v9  ;;  %v559_v19 = vcombine.high %v877_v5, %v879_v6  ;;  %v558_v20 = vcombine.low %v877_v5, %v879_v6  ;;  %s810_s7 = smov 64   ;;  %s576_s8 = sshll.u32 %s789_s6, 4  ;;  %s789_s6 = sphi %s904_s6, %s234_s6   ;;  %v785_v7 = vphi %v227_v7, %v994_v7   ;;  %v781_v10 = vphi %v228_v10, %v993_v10   ;;  %v777_v11 = vphi %v229_v11, %v992_v11   ;;  %v773_v12 = vphi %v230_v12, %v991_v12  }
  0x29   : >> { %v809_v21 = vmov 0   ;;  %v557_v22 = vcombine.high %v868_v3, %v875_v4  ;;  %372 = vrot.lane.b32.xlu1 %v777_v11, %s810_s7  ;;  %v556_v23 = vcombine.low %v868_v3, %v875_v4  ;;  %v555_v24 = vcombine.high %v864_v1, %v866_v2  ;;  %s243_s9 = scalar_lea.vmem %s859_s25, %s576_s8  ;;  %s234_s6 = sadd.s32 1, %s789_s6  }
  0x2a   : >> { %303 = vmatprep.subr.bf16.mxu0 %v561_v17  ;;  %327 = vmatprep.mubr.bf16.mxu0 %v809_v21  ;;  %v554_v25 = vcombine.low %v864_v1, %v866_v2  ;;  %v250_v26 = vpack.c.bf16 %v781_v10, %v785_v7  ;;  %v244_v27 = vld [vmem:[%s243_s9] sm:$0xff]  ;;  %v245_v28 = vld [vmem:[%s243_s9 + $0x8] sm:$0xff]  ;;  %p233_p13 = scmp.ge.s32.totalorder %s234_s6, %s1008_s20 }
  0x2b   : >> { %304 = vmatpush1.bf16.msra.mxu0 %v560_v18  ;;  %v247_v29 = vunpack.c.h.bf16 %v244_v27  ;;  %v248_v31 = vunpack.c.l.bf16 %v245_v28  ;;  %v249_v34 = vunpack.c.h.bf16 %v245_v28  ;;  %v246_v51 = vunpack.c.l.bf16 %v244_v27 }
  0x2c   : >> { %305 = vmatprep.subr.bf16.mxu0 %v559_v19 }
  0x2d   : >> { %374 = vrot.lane.b32.xlu1 %v773_v12, %s810_s7 }
  0x2f   : >> { %306 = vmatpush1.bf16.msra.mxu0 %v558_v20 }
  0x30   : >> { %307 = vmatprep.subr.bf16.mxu0 %v557_v22 }
  0x33   : >> { %308 = vmatpush1.bf16.msra.mxu0 %v556_v23 }
  0x34   : >> { %309 = vmatprep.subr.bf16.mxu0 %v555_v24 }
  0x37   : >> { %310 = vmatpush1.bf16.msra.mxu0 %v554_v25 }
  0x3a   : >> { %562 = vmatmul.mubr.msk.bf16.vlgmr.msra.gmra.mxu0 %vm207_vm0, %v250_v26 }
  0x9b   : >> { %v373_v7 = vpop.permute.xlu1 %372 }
  0x9f   : >> { %v375_v11 = vpop.permute.xlu1 %374 }
  0xfa   : >> { %v329_v30 = vpop.f32.mrf.mxu0 }
  0xfb   : >> { %v338_v52 = vadd.f32 %v329_v30, %v246_v51 }
  0xfc   : >> { %v331_v32 = vpop.f32.mrf.mxu0 }
  0xfd   : >> { %v339_v33 = vadd.f32 %v331_v32, %v247_v29  ;;  %v563_v53 = vmul.f32 -1.442695, %v338_v52 }
  0xfe   : >> { %v333_v35 = vpop.f32.mrf.mxu0 }
  0xff   : >> { %v564_v36 = vmul.f32 -1.442695, %v339_v33  ;;  %v340_v37 = vadd.f32 %v333_v35, %v248_v31 }
 0x100   : >> { %v335_v38 = vpop.f32.mrf.mxu0 }
 0x101   : >> { %677 = vpow2.f32 %v564_v36  ;;  %v341_v39 = vadd.f32 %v335_v38, %v249_v34  ;;  %v565_v54 = vmul.f32 -1.442695, %v340_v37 }
 0x103   : >> { %v566_v40 = vmul.f32 -1.442695, %v341_v39 }
 0x105   : >> { %679 = vpow2.f32 %v566_v40 }
 0x10e   : >> { %v678_v41 = vpop.eup %677 }
 0x10f   : >> { %v355_v42 = vadd.f32 1.0, %v678_v41 }
 0x111   : >> { %681 = vrcp.f32 %v355_v42 }
 0x112   : >> { %v680_v43 = vpop.eup %679 }
 0x113   : >> { %v357_v44 = vadd.f32 1.0, %v680_v43 }
 0x115   : >> { %683 = vrcp.f32 %v357_v44 }
 0x116   : >> { %685 = vpow2.f32 %v563_v53 }
 0x117   : >> { %687 = vpow2.f32 %v565_v54 }
 0x11e   : >> { %v682_v45 = vpop.eup %681 }
 0x11f   : >> { %v366_v46 = vmul.f32 2.0, %v682_v45 }
 0x121   : >> { %v567_v47 = vadd.f32 -1.0, %v366_v46 }
 0x122   : >> { %v684_v48 = vpop.eup %683 }
 0x123   : >> { %382 = vrot.lane.b32.xlu0 %v567_v47, %s810_s7  ;;  %v367_v49 = vmul.f32 2.0, %v684_v48  ;;  %v686_v55 = vpop.eup %685 }
 0x124   : >> { %v354_v56 = vadd.f32 1.0, %v686_v55  ;;  %v688_v57 = vpop.eup %687 }
 0x125   : >> { %v568_v50 = vadd.f32 -1.0, %v367_v49  ;;  %v356_v58 = vadd.f32 1.0, %v688_v57 }
 0x126   : >> { %689 = vrcp.f32 %v354_v56 }
 0x127   : >> { %384 = vrot.lane.b32.xlu0 %v568_v50, %s810_s7  ;;  %691 = vrcp.f32 %v356_v58 }
 0x133   : >> { %v690_v59 = vpop.eup %689 }
 0x134   : >> { %v692_v62 = vpop.eup %691  ;;  %v378_v10 = vmul.f32 %v690_v59, %v373_v7 }
 0x135   : >> { %v379_v14 = vmul.f32 %v692_v62, %v375_v11 }
 0x195   : >> { %v383_v60 = vpop.permute.xlu0 %382 }
 0x196   : >> { %v388_v61 = vmul.f32 %v690_v59, %v383_v60 }
 0x198   : >> { %392 = vrot.lane.b32.xlu0 %v388_v61, %s810_s7 }
 0x199   : >> { %v385_v63 = vpop.permute.xlu0 %384 }
 0x19a   : >> { %v389_v0 = vmul.f32 %v692_v62, %v385_v63 }
 0x19c   : >> { %394 = vrot.lane.b32.xlu1 %v389_v0, %s810_s7 }
 0x20a   : >> { %v393_v12 = vpop.permute.xlu0 %392 }
 0x20b   : >> { %v398_v13 = vadd.f32 %v393_v12, %v378_v10 }
 0x20d   : >> { %693 = vtanh.f32 %v398_v13 }
 0x20e   : >> { %v395_v15 = vpop.permute.xlu1 %394 }
 0x20f   : >> { %v399_v16 = vadd.f32 %v395_v15, %v379_v14 }
 0x211   : >> { %695 = vtanh.f32 %v399_v16 }
 0x21a   : >> { %v694_v17 = vpop.eup %693 }
 0x21b   : >> { %404 = vrot.lane.b32.xlu0 %v694_v17, %s810_s7 }
 0x21e   : >> { %v696_v18 = vpop.eup %695 }
 0x21f   : >> { %414 = vrot.lane.b32.xlu0 %v398_v13, %s810_s7  ;;  %406 = vrot.lane.b32.xlu1 %v696_v18, %s810_s7 }
 0x223   : >> { %416 = vrot.lane.b32.xlu1 %v399_v16, %s810_s7 }
 0x28d   : >> { %v405_v19 = vpop.permute.xlu0 %404 }
 0x28e   : >> { %v410_v20 = vmul.f32 %v682_v45, %v405_v19  }
 0x290   : >> { %v994_v7 = vmov %v410_v20  ;;  %v998_v16 = vmov (%p233_p13), %v410_v20 }
 0x291   : >> { %v415_v21 = vpop.permute.xlu0 %414   ;;  %v407_v22 = vpop.permute.xlu1 %406 }
 0x292   : >> { %v411_v23 = vmul.f32 %v684_v48, %v407_v22   ;;  %v992_v11 = vmov %v415_v21  ;;  %236 = sbr.rel (!%p233_p13) target bundleno = 40 (0x28), region = 77  ;;  %v996_v14 = vmov (%p233_p13), %v415_v21 }
 0x294   : >> { %v993_v10 = vmov %v411_v23  ;;  %v997_v15 = vmov (%p233_p13), %v411_v23 }
 0x295   : >> { %v417_v24 = vpop.permute.xlu1 %416  }
 0x296   : >> { %v991_v12 = vmov %v417_v24  ;;  %v995_v13 = vmov (%p233_p13), %v417_v24 }
 0x297 PF: > { %421 = vst.msk [vmem:[#allocation2] sm:$0xff] %vm207_vm0, %v805_v16  ;;  %422 = vst.msk [vmem:[#allocation2 + $0x8] sm:$0xff] %vm207_vm0, %v801_v15  ;;  %v805_v16 = vphi %v990_v16, %v998_v16   ;;  %v801_v15 = vphi %v989_v15, %v997_v15   ;;  %v797_v14 = vphi %v988_v14, %v996_v14   ;;  %v793_v13 = vphi %v987_v13, %v995_v13  }
 0x298   : > { %423 = vst.msk [vmem:[#allocation3] sm:$0xff] %vm207_vm0, %v797_v14  ;;  %424 = vst.msk [vmem:[#allocation3 + $0x8] sm:$0xff] %vm207_vm0, %v793_v13 }
 0x29e   : > { %v428_v1 = vld [vmem:[#allocation2] sm:$0xff]  ;;  %v429_v2 = vld [vmem:[#allocation2 + $0x8] sm:$0xff] }
 0x29f   : > { %430 = vst.msk [vmem:[%s873_s5] sm:$0xff] %vm207_vm0, %v428_v1  ;;  %431 = vst.msk [vmem:[%s873_s5 + $0x8] sm:$0xff] %vm207_vm0, %v429_v2 }
 0x2a0 PF: > { %s19_s19 = sadd.s32 1, %s769_s19   ;;  %s999_s17 = smov %s765_s18 }
 0x2a1   : > { %p16_p0 = scmp.ge.s32.totalorder %s19_s19, 5   ;;  %s1000_s18 = smov %s1002_s0 }
 0x2a3   :  { %18 = sbr.rel (!%p16_p0) target bundleno = 17 (0x11), region = 88 }

</bundles_post_ra>
